<compile_context>
chip_gen: v6e
topology: v6e:2x2x1
jax: 0.10.0
libtpu: 0.0.40
codegen_flags: <defaults>
</compile_context>

<pallas_src>
import functools

import jax
import jax.numpy as jnp
from jax.experimental import pallas as pl
from jax.experimental.pallas import tpu as pltpu

LANE = 128      # vreg lane width
SUBLANE = 8     # f32 sublane count


def _round_up(n, m):
    return ((n + m - 1) // m) * m


def policy_kernel(x_ref, w1_ref, b1_ref, w2_ref, b2_ref, out_ref, *, num_actions):
    # linear1 + ReLU (MXU matmul, f32 accumulation); hidden dim is 128-padded.
    x = x_ref[...]
    h = jnp.dot(x, w1_ref[...], preferred_element_type=jnp.float32) + b1_ref[...]
    h = jnp.maximum(h, 0.0)

    # linear2; action dim is 128-padded -> lane-dense logits for the softmax
    # reductions.  Padded action lanes carry bias -1e30 (baked into b2p), so
    # they contribute exp(.) == 0 below -- no iota/where mask needed here.
    logits = jnp.dot(h, w2_ref[...], preferred_element_type=jnp.float32) + b2_ref[...]

    # numerically-stable softmax along the last (lane) axis
    m = jnp.max(logits, axis=-1, keepdims=True)
    e = jnp.exp(logits - m)
    denom = jnp.sum(e, axis=-1, keepdims=True)
    probs = e / denom                      # exact divide: rows sum to 1 (f32)

    # store only the real action columns (out block last dim == num_actions)
    out_ref[...] = probs[:, :num_actions].astype(out_ref.dtype)


def policy_forward(x, w1p, b1p, w2p, b2p, num_actions, *, max_batch_tile=2048):
    """x: (B, num_inputs) f32; padded params from pad_policy_params.
    Returns (B, num_actions) f32 softmax probabilities."""
    B, K = x.shape
    H_pad = w1p.shape[1]
    A_pad = w2p.shape[1]

    # Batch tile: as large as possible (fewer serial grid steps on v5e/v6e),
    # but capped at ceil(B/2) rounded to the sublane multiple so that large
    # batches produce >= 2 grid steps for the "parallel" axis (v7x megacore).
    half = _round_up(max(1, -(-B // 2)), SUBLANE)
    tb = max(SUBLANE, min(max_batch_tile, half))
    B_pad = _round_up(B, tb)
    if B_pad != B:
        x = jnp.pad(x, ((0, B_pad - B), (0, 0)))
    nb = B_pad // tb

    flops = 2 * B_pad * (K * H_pad + H_pad * A_pad)
    transcendentals = B_pad * A_pad  # exp
    bytes_accessed = 4 * (B_pad * K + K * H_pad + H_pad
                          + H_pad * A_pad + A_pad + B_pad * num_actions)

    out = pl.pallas_call(
        functools.partial(policy_kernel, num_actions=num_actions),
        out_shape=jax.ShapeDtypeStruct((B_pad, num_actions), jnp.float32),
        grid=(nb,),
        in_specs=[
            pl.BlockSpec((tb, K), lambda i: (i, 0)),         # x   (batch-tiled)
            pl.BlockSpec((K, H_pad), lambda i: (0, 0)),      # W1  (resident)
            pl.BlockSpec((1, H_pad), lambda i: (0, 0)),      # b1  (resident)
            pl.BlockSpec((H_pad, A_pad), lambda i: (0, 0)),  # W2  (resident)
            pl.BlockSpec((1, A_pad), lambda i: (0, 0)),      # b2  (resident, mask baked in)
        ],
        out_specs=pl.BlockSpec((tb, num_actions), lambda i: (i, 0)),
        compiler_params=pltpu.CompilerParams(
            dimension_semantics=("parallel",)),
        cost_estimate=pl.CostEstimate(
            flops=flops,
            transcendentals=transcendentals,
            bytes_accessed=bytes_accessed),
    )(x, w1p, b1p, w2p, b2p)

    # only batch padding (if any) needs slicing; action columns are already exact
    return out[:B, :] if B_pad != B else out


def init_policy_params(key, num_inputs, hidden_size, num_actions):
    """Deterministic init mimicking PyTorch nn.Linear default:
    U(-1/sqrt(fan_in), 1/sqrt(fan_in)) for both weight and bias.
    Weights are stored transposed: (in_features, out_features)."""
    k1, k2, k3, k4 = jax.random.split(key, 4)
    bound1 = 1.0 / jnp.sqrt(num_inputs)
    bound2 = 1.0 / jnp.sqrt(hidden_size)
    w1 = jax.random.uniform(k1, (num_inputs, hidden_size), jnp.float32, -bound1, bound1)
    b1 = jax.random.uniform(k2, (hidden_size,), jnp.float32, -bound1, bound1)
    w2 = jax.random.uniform(k3, (hidden_size, num_actions), jnp.float32, -bound2, bound2)
    b2 = jax.random.uniform(k4, (num_actions,), jnp.float32, -bound2, bound2)
    return w1, b1, w2, b2


def pad_policy_params(w1, b1, w2, b2):
    """Zero-pad hidden and action dims up to 128 lanes (done once at init).

    The padded action-bias lanes are set to -1e30 so the padded logits are
    exactly -1e30 and exp(.) underflows to 0 in the kernel's softmax.  This is
    purely a layout artifact of the padded forward pass -- any gradient /
    training path over these padded params must ignore those lanes.
    """
    K, H = w1.shape
    _, A = w2.shape
    H_pad = _round_up(H, LANE)
    A_pad = _round_up(A, LANE)
    w1p = jnp.zeros((K, H_pad), jnp.float32).at[:, :H].set(w1)
    b1p = jnp.zeros((1, H_pad), jnp.float32).at[0, :H].set(b1)
    w2p = jnp.zeros((H_pad, A_pad), jnp.float32).at[:H, :A].set(w2)
    b2p = jnp.full((1, A_pad), -1e30, jnp.float32).at[0, :A].set(b2)
    return w1p, b1p, w2p, b2p


if __name__ == "__main__":
    # Small shapes consistent with Policy(hidden_size, num_inputs, action_space)
    batch = 8
    num_inputs = 16
    hidden_size = 32
    num_actions = 4  # action_space.n

    key = jax.random.PRNGKey(0)
    kx, kp = jax.random.split(key)
    x = jax.random.normal(kx, (batch, num_inputs), dtype=jnp.float32)

    w1, b1, w2, b2 = init_policy_params(kp, num_inputs, hidden_size, num_actions)
    w1p, b1p, w2p, b2p = pad_policy_params(w1, b1, w2, b2)

    probs = policy_forward(x, w1p, b1p, w2p, b2p, num_actions)
    probs = jax.block_until_ready(probs)

    # sanity check against a pure-JAX reference (unpadded math)
    h_ref = jnp.maximum(x @ w1 + b1[None, :], 0.0)
    logits_ref = h_ref @ w2 + b2[None, :]
    probs_ref = jax.nn.softmax(logits_ref, axis=-1)

    assert probs.shape == (batch, num_actions)
    assert jnp.allclose(probs, probs_ref, atol=2e-3, rtol=2e-3)
    # exact divide in-kernel -> rows sum to 1 within f32 rounding
    assert jnp.allclose(jnp.sum(probs, axis=-1), 1.0, atol=1e-5)

    # TODO(synk): fuse action sampling (pltpu.prng_seed + pltpu.prng_random_bits
    # + cumulative-sum compare over the 128-lane prob vreg) so one launch covers
    # the whole act() path per rollout step and writes 4 B/row instead of probs.
    print("KERNEL_OK")
</pallas_src>

<mosaic_0001>
module attributes {stable_mosaic.version = 11 : i64} {
  func.func @policy_kernel(%arg0: i32, %arg1: memref<8x16xf32, #tpu.memory_space<vmem>>, %arg2: memref<16x128xf32, #tpu.memory_space<vmem>>, %arg3: memref<1x128xf32, #tpu.memory_space<vmem>>, %arg4: memref<128x128xf32, #tpu.memory_space<vmem>>, %arg5: memref<1x128xf32, #tpu.memory_space<vmem>>, %arg6: memref<8x4xf32, #tpu.memory_space<vmem>>) attributes {dimension_semantics = [#tpu.dimension_semantics<parallel>], iteration_bounds = array<i64: 1>, scalar_prefetch = 0 : i64, scratch_operands = 0 : i64, tpu.core_type = #tpu.core_type<tc>, window_params = [{transform_indices = @transform_0, window_bounds = array<i64: 8, 16>}, {pipeline_mode = #tpu.pipeline_mode<synchronous>, transform_indices = @transform_1, window_bounds = array<i64: 16, 128>}, {pipeline_mode = #tpu.pipeline_mode<synchronous>, transform_indices = @transform_2, window_bounds = array<i64: 1, 128>}, {pipeline_mode = #tpu.pipeline_mode<synchronous>, transform_indices = @transform_3, window_bounds = array<i64: 128, 128>}, {pipeline_mode = #tpu.pipeline_mode<synchronous>, transform_indices = @transform_4, window_bounds = array<i64: 1, 128>}, {transform_indices = @transform_5, window_bounds = array<i64: 8, 4>}]} {
    %c0 = arith.constant 0 : index
    %c0_0 = arith.constant 0 : index
    %0 = vector.load %arg1[%c0, %c0_0] : memref<8x16xf32, #tpu.memory_space<vmem>>, vector<8x16xf32>
    %c0_1 = arith.constant 0 : index
    %c0_2 = arith.constant 0 : index
    %1 = vector.load %arg2[%c0_1, %c0_2] : memref<16x128xf32, #tpu.memory_space<vmem>>, vector<16x128xf32>
    %cst = arith.constant dense<0.000000e+00> : vector<8x128xf32>
    %2 = tpu.matmul %0, %1, %cst {dimension_numbers = #tpu.dot_dimension_numbers<[1], [0], [0], [1], [0, 0, 1, 1], [], []>} : vector<8x16xf32>, vector<16x128xf32>, vector<8x128xf32> -> vector<8x128xf32>
    %c0_3 = arith.constant 0 : index
    %c0_4 = arith.constant 0 : index
    %3 = vector.load %arg3[%c0_3, %c0_4] : memref<1x128xf32, #tpu.memory_space<vmem>>, vector<1x128xf32>
    %4 = vector.broadcast %3 : vector<1x128xf32> to vector<8x128xf32>
    %5 = arith.addf %2, %4 : vector<8x128xf32>
    %cst_5 = arith.constant 0.000000e+00 : f32
    %6 = vector.broadcast %cst_5 : f32 to vector<8x128xf32>
    %7 = arith.maximumf %5, %6 : vector<8x128xf32>
    %c0_6 = arith.constant 0 : index
    %c0_7 = arith.constant 0 : index
    %8 = vector.load %arg4[%c0_6, %c0_7] : memref<128x128xf32, #tpu.memory_space<vmem>>, vector<128x128xf32>
    %cst_8 = arith.constant dense<0.000000e+00> : vector<8x128xf32>
    %9 = tpu.matmul %7, %8, %cst_8 {dimension_numbers = #tpu.dot_dimension_numbers<[1], [0], [0], [1], [0, 0, 1, 1], [], []>} : vector<8x128xf32>, vector<128x128xf32>, vector<8x128xf32> -> vector<8x128xf32>
    %c0_9 = arith.constant 0 : index
    %c0_10 = arith.constant 0 : index
    %10 = vector.load %arg5[%c0_9, %c0_10] : memref<1x128xf32, #tpu.memory_space<vmem>>, vector<1x128xf32>
    %11 = vector.broadcast %10 : vector<1x128xf32> to vector<8x128xf32>
    %12 = arith.addf %9, %11 : vector<8x128xf32>
    %cst_11 = arith.constant dense<0xFF800000> : vector<8xf32>
    %13 = vector.multi_reduction <maximumf>, %12, %cst_11 [1] : vector<8x128xf32> to vector<8xf32>
    %14 = vector.shape_cast %13 : vector<8xf32> to vector<8x1xf32>
    %15 = vector.broadcast %14 : vector<8x1xf32> to vector<8x128xf32>
    %16 = arith.subf %12, %15 : vector<8x128xf32>
    %17 = math.exp %16 : vector<8x128xf32>
    %cst_12 = arith.constant dense<0.000000e+00> : vector<8xf32>
    %18 = vector.multi_reduction <add>, %17, %cst_12 [1] : vector<8x128xf32> to vector<8xf32>
    %19 = vector.shape_cast %18 : vector<8xf32> to vector<8x1xf32>
    %20 = vector.broadcast %19 : vector<8x1xf32> to vector<8x128xf32>
    %21 = arith.divf %17, %20 : vector<8x128xf32>
    %22 = vector.extract_strided_slice %21 {offsets = [0, 0], sizes = [8, 4], strides = [1, 1]} : vector<8x128xf32> to vector<8x4xf32>
    %c0_13 = arith.constant 0 : index
    %c0_14 = arith.constant 0 : index
    %23 = vector.load %arg6[%c0_13, %c0_14] : memref<8x4xf32, #tpu.memory_space<vmem>>, vector<8x4xf32>
    tpu.vector_store %arg6[%c0_13, %c0_14], %22 {strides = array<i32>} : memref<8x4xf32, #tpu.memory_space<vmem>>, vector<8x4xf32>,
    return
  }
  func.func @transform_0(%arg0: i32) -> (i32, i32) {
    %c0_i32 = arith.constant 0 : i32
    %c0_i32_0 = arith.constant 0 : i32
    return %arg0, %c0_i32 : i32, i32
  }
  func.func @transform_1(%arg0: i32) -> (i32, i32) {
    %c0_i32 = arith.constant 0 : i32
    %c0_i32_0 = arith.constant 0 : i32
    %c0_i32_1 = arith.constant 0 : i32
    return %c0_i32, %c0_i32_0 : i32, i32
  }
  func.func @transform_2(%arg0: i32) -> (i32, i32) {
    %c0_i32 = arith.constant 0 : i32
    %c0_i32_0 = arith.constant 0 : i32
    %c0_i32_1 = arith.constant 0 : i32
    return %c0_i32, %c0_i32_0 : i32, i32
  }
  func.func @transform_3(%arg0: i32) -> (i32, i32) {
    %c0_i32 = arith.constant 0 : i32
    %c0_i32_0 = arith.constant 0 : i32
    %c0_i32_1 = arith.constant 0 : i32
    return %c0_i32, %c0_i32_0 : i32, i32
  }
  func.func @transform_4(%arg0: i32) -> (i32, i32) {
    %c0_i32 = arith.constant 0 : i32
    %c0_i32_0 = arith.constant 0 : i32
    %c0_i32_1 = arith.constant 0 : i32
    return %c0_i32, %c0_i32_0 : i32, i32
  }
  func.func @transform_5(%arg0: i32) -> (i32, i32) {
    %c0_i32 = arith.constant 0 : i32
    %c0_i32_0 = arith.constant 0 : i32
    return %arg0, %c0_i32 : i32, i32
  }
}

</mosaic_0001>

<bundles_post_ra>
// kernel: tpu_custom_call.1
= control target key start
LH: loop header
LB: loop body
LE: loop exit
PB: predicated region body
PF: predicated region fallthrough
CT: control target
= control target key end

     0   :  { %10 = vsyncpa [#allocation3], 0  ;;  %s449_s0 = inlined_call_operand.hbm [shape: f32[8,16], index: 0, kind: input, shape index: {}]   ;;  %s450_s1 = inlined_call_operand.hbm [shape: f32[16,128], index: 1, kind: input, shape index: {}]   ;;  %s451_s2 = inlined_call_operand.vmem [shape: f32[1,128], index: 2, kind: input, shape index: {}]   ;;  %s452_s3 = inlined_call_operand.hbm [shape: f32[128,128], index: 3, kind: input, shape index: {}]   ;;  %s453_s4 = inlined_call_operand.vmem [shape: f32[1,128], index: 4, kind: input, shape index: {}]   ;;  %s454_s5 = inlined_call_operand.vmem [shape: f32[8,4], index: 5, kind: output, shape index: {}]  }
   0x1   :  { %11 = vsyncpa [#allocation5], 0  ;;  %s394_s18 = smov [#allocation4]  }
   0x2   :  { %s27_s19 = sshll.u32 %s394_s18, 4  ;;  %s28_s19 = int_to_ptr.vmem [resolvable:$true] %s27_s19 }
   0x3   :  { %s338_s20 = scalar_lea.vmem %s28_s19, 256  ;;  %p343_p1 = scmp.lt.s32.totalorder %s28_s19, %s28_s19 }
   0x4   :  { %p339_p0 = scmp.ne.s32.totalorder %s28_s19, %s338_s20  ;;  %p344_p2 = scmp.lt.s32.totalorder %s338_s20, %s338_s20 }
   0x6   :  { %p345_p3 = por %p344_p2, %p343_p1 }
   0x8   :  { %p346_p4 = pnand %p345_p3, %p339_p0 }
   0xa   :  { %349 = shalt.err (!%p346_p4)
}
   0xb   :  { %s395_s21 = smov 128   ;;  %s396_s22 = smov 8  }
   0xc   :  { %33 = dma.hbm_to_vmem [thread:$0]  %s450_s1, 256, %s28_s19, [#allocation5], %s395_s21, %s395_s21, %s396_s22  }
   0xd   :  { %s397_s25 = smov [#allocation2]   ;;  %s398_s27 = smov [#allocation6]  }
   0xe   :  { %s18_s26 = sshll.u32 %s397_s25, 4  ;;  %s41_s28 = sshll.u32 %s398_s27, 4  ;;  %s19_s26 = int_to_ptr.vmem [resolvable:$true] %s18_s26  ;;  %s42_s28 = int_to_ptr.vmem [resolvable:$true] %s41_s28 }
   0xf   :  { %s358_s29 = scalar_lea.vmem %s19_s26, 128  ;;  %p363_p6 = scmp.lt.s32.totalorder %s19_s26, %s19_s26 }
  0x10   :  { %p359_p5 = scmp.ne.s32.totalorder %s19_s26, %s358_s29  ;;  %p364_p7 = scmp.lt.s32.totalorder %s358_s29, %s358_s29 }
  0x12   :  { %p365_p8 = por %p364_p7, %p363_p6 }
  0x14   :  { %p366_p9 = pnand %p365_p8, %p359_p5 }
  0x16   :  { %369 = shalt.err (!%p366_p9)
}
  0x17   :  { %21 = dma.hbm_to_vmem [thread:$0]  %s449_s0, 128, %s19_s26, [#allocation3]  }
  0x18   :  { %s378_s7 = scalar_lea.vmem %s42_s28, 2048  ;;  %p383_p11 = scmp.lt.s32.totalorder %s42_s28, %s42_s28 }
  0x19   :  { %p379_p10 = scmp.ne.s32.totalorder %s42_s28, %s378_s7  ;;  %p384_p12 = scmp.lt.s32.totalorder %s378_s7, %s378_s7 }
  0x1b   :  { %p385_p13 = por %p384_p12, %p383_p11 }
  0x1d   :  { %p386_p0 = pnand %p385_p13, %p379_p10 }
  0x1f   :  { %389 = shalt.err (!%p386_p0)
}
  0x20   :  { %47 = dma.hbm_to_vmem [thread:$0]  %s452_s3, 2048, %s42_s28, [#allocation5], %s395_s21, %s395_s21, %s396_s22  }
  0x21   :  { %390 = dma.done.wait [#allocation3], 128  }
  0x22   :  { %391 = vsyncadd [#allocation3], 4294967168 }
  0x23   :  { %392 = dma.done.wait [#allocation5], 2304  }
  0x24   :  { %393 = vsyncadd [#allocation5], 4294964992  ;;  %v399_v0 = vmov 0.0   ;;  %vm400_vm0 = vmmov 0   ;;  %v61_v1 = vld [vmem:[#allocation4 + $0x8] sm:$0xff]  ;;  %v60_v2 = vld [vmem:[#allocation4] sm:$0xff] }
  0x25   :  { %277 = vmatprep.subr.mxu0 %v399_v0  ;;  %281 = vmatprep.mubr.msk.f32.mxu0 %vm400_vm0, %v399_v0  ;;  %v59_v3 = vld [vmem:[#allocation2] sm:$0xff]  ;;  %vm69_vm1 = vcmask 130048   ;;  %v159_v4 = vld [vmem:[#allocation6 + $0x78] sm:$0xff]  ;;  %v158_v5 = vld [vmem:[#allocation6 + $0x70] sm:$0xff]  ;;  %vm246_vm2 = vcmask 31744  }
  0x26   :  { %284 = vmatprep.subr.mxu1 %v399_v0  ;;  %316 = vmatprep.mubr.msk.f32.mxu1 %vm400_vm0, %v399_v0  ;;  %v157_v6 = vld [vmem:[#allocation6 + $0x68] sm:$0xff]  ;;  %v156_v7 = vld [vmem:[#allocation6 + $0x60] sm:$0xff]  ;;  %v155_v8 = vld [vmem:[#allocation6 + $0x58] sm:$0xff] }
  0x27   :  { %278 = vmatpush3.msra.mxu0 %v61_v1  ;;  %285 = vmatpush3.msra.mxu1 %v159_v4  ;;  %v154_v9 = vld [vmem:[#allocation6 + $0x50] sm:$0xff]  ;;  %v153_v10 = vld [vmem:[#allocation6 + $0x48] sm:$0xff]  ;;  %v152_v11 = vld [vmem:[#allocation6 + $0x40] sm:$0xff] }
  0x28   :  { %279 = vmatprep.subr.mxu0 %v399_v0  ;;  %286 = vmatprep.subr.mxu1 %v399_v0  ;;  %v151_v12 = vld [vmem:[#allocation6 + $0x38] sm:$0xff]  ;;  %v150_v13 = vld [vmem:[#allocation6 + $0x30] sm:$0xff]  ;;  %v149_v14 = vld [vmem:[#allocation6 + $0x28] sm:$0xff] }
  0x29   :  { %280 = vmatpush3.msra.mxu0 %v60_v2  ;;  %287 = vmatpush3.msra.mxu1 %v158_v5  ;;  %v148_v15 = vld [vmem:[#allocation6 + $0x20] sm:$0xff]  ;;  %v147_v16 = vld [vmem:[#allocation6 + $0x18] sm:$0xff]  ;;  %v146_v17 = vld [vmem:[#allocation6 + $0x10] sm:$0xff] }
  0x2a   :  { %282 = vmatmul.mubr.msk.f32.vlgmr.msra.gmra.mxu0 %vm69_vm1, %v59_v3  ;;  %288 = vmatprep.subr.mxu1 %v399_v0  ;;  %v145_v18 = vld [vmem:[#allocation6 + $0x8] sm:$0xff]  ;;  %v144_v19 = vld [vmem:[#allocation6] sm:$0xff] }
  0x2b   :  { %289 = vmatpush3.msra.mxu1 %v157_v6  ;;  %v254_v20 = vld [vmem:[%s451_s2] ss:$0 sm:$0xff] }
  0x2c   :  { %290 = vmatprep.subr.mxu1 %v399_v0  ;;  %v256_v25 = vld [vmem:[%s453_s4] ss:$0 sm:$0xff] }
  0x2d   :  { %291 = vmatpush3.msra.mxu1 %v156_v7 }
  0x2e   :  { %292 = vmatprep.subr.mxu1 %v399_v0 }
  0x2f   :  { %293 = vmatpush3.msra.mxu1 %v155_v8 }
  0x30   :  { %294 = vmatprep.subr.mxu1 %v399_v0 }
  0x31   :  { %295 = vmatpush3.msra.mxu1 %v154_v9 }
  0x32   :  { %296 = vmatprep.subr.mxu1 %v399_v0 }
  0x33   :  { %297 = vmatpush3.msra.mxu1 %v153_v10 }
  0x34   :  { %298 = vmatprep.subr.mxu1 %v399_v0 }
  0x35   :  { %299 = vmatpush3.msra.mxu1 %v152_v11 }
  0x36   :  { %300 = vmatprep.subr.mxu1 %v399_v0 }
  0x37   :  { %301 = vmatpush3.msra.mxu1 %v151_v12 }
  0x38   :  { %302 = vmatprep.subr.mxu1 %v399_v0 }
  0x39   :  { %303 = vmatpush3.msra.mxu1 %v150_v13 }
  0x3a   :  { %304 = vmatprep.subr.mxu1 %v399_v0 }
  0x3b   :  { %305 = vmatpush3.msra.mxu1 %v149_v14 }
  0x3c   :  { %306 = vmatprep.subr.mxu1 %v399_v0 }
  0x3d   :  { %307 = vmatpush3.msra.mxu1 %v148_v15 }
  0x3e   :  { %308 = vmatprep.subr.mxu1 %v399_v0 }
  0x3f   :  { %309 = vmatpush3.msra.mxu1 %v147_v16 }
  0x40   :  { %310 = vmatprep.subr.mxu1 %v399_v0 }
  0x41   :  { %311 = vmatpush3.msra.mxu1 %v146_v17 }
  0x42   :  { %312 = vmatprep.subr.mxu1 %v399_v0 }
  0x43   :  { %313 = vmatpush3.msra.mxu1 %v145_v18 }
  0x44   :  { %314 = vmatprep.subr.mxu1 %v399_v0 }
  0x45   :  { %315 = vmatpush3.msra.mxu1 %v144_v19 }
  0xea   :  { %v139_v21 = vpop.f32.mrf.mxu0 }
  0xeb   :  { %v140_v22 = vadd.f32 %v254_v20, %v139_v21 }
  0xec   :  { %v283_v23 = vpop.f32.mrf.mxu0 }
  0xed   :  { %v143_v24 = vmax.f32 %v140_v22, 0.0 }
  0xef   :  { %317 = vmatmul.mubr.f32.vlgmr.msra.gmra.mxu1 %v143_v24 }
 0x1af   :  { %v233_v26 = vpop.f32.mrf.mxu1 }
 0x1b0   :  { %v234_v27 = vadd.f32 %v256_v25, %v233_v26 }
 0x1b1   :  { %v318_v28 = vpop.f32.mrf.mxu1 }
 0x1b2   :  { %237 = vmax.xlane.f32.xlu0 %v234_v27 }
 0x23b   :  { %v238_v29 = vpop.xlane.xlu0 %237 }
 0x23c   :  { %v239_v30 = vsub.f32 %v234_v27, %v238_v29 }
 0x23e   :  { %v240_v31 = vmul.f32 1.442695, %v239_v30 }
 0x240   :  { %326 = vpow2.f32 %v240_v31 }
 0x24d   :  { %v327_v32 = vpop.eup %326 }
 0x24e   :  { %242 = vadd.xlane.f32.xlu0 %v327_v32 }
 0x2d7   :  { %v243_v33 = vpop.xlane.xlu0 %242 }
 0x2d8   :  { %328 = vrcp.f32 %v243_v33 }
 0x2e5   :  { %v329_v34 = vpop.eup %328 }
 0x2e6   :  { %v245_v35 = vmul.f32 %v329_v34, %v327_v32 }
 0x2e8   :  { %247 = vst.msk [vmem:[%s454_s5] sm:$0xff] %vm246_vm2, %v245_v35 }
 0x2e9   :  { %252 = vsyncpa [#allocation3], 1 }
 0x2ea   :  { %253 = vsyncpa [#allocation5], 1 }

</bundles_post_ra>
